<compile_context>
chip_gen: v7x
topology: tpu7x:2x2x1
jax: 0.10.0
libtpu: 0.0.40
codegen_flags: <defaults>
</compile_context>

<pallas_src>
import functools

import jax
import jax.numpy as jnp
from jax.experimental import pallas as pl
from jax.experimental.pallas import tpu as pltpu


# ------------------------------ module config ------------------------------ #

CONV_ARCH = [1, 4]          # Conv2d(1 -> 4, 5x5, stride 2)
NY, NX = 16, 16             # input field is ny*nx = 256 per sample
KH, KW, STRIDE = 5, 5, 2
_OH = (NY - KH) // STRIDE + 1
_OW = (NX - KW) // STRIDE + 1
FLAT = CONV_ARCH[-1] * _OH * _OW          # 4 * 6 * 6 = 144
FC_ARCH = [FLAT, 32, 16]

_TM_MAX = 2048   # 2 MiB f32 x-tile; double-buffered fits v5e's 16 MiB scoped VMEM
_TM_MIN = 1024   # keep tiles >= 1 MiB so per-step overhead (~0.35 us) is amortized


# ------------------------------ Pallas kernel ------------------------------ #

def _fused_mlp_kernel(x_ref, *refs, n_layers):
    """Fused chain of (matmul + bias [+ ReLU]) stages.

    refs = (w0, b0, w1, b1, ..., w_{n-1}, b_{n-1}, out).
    ReLU after every stage except the last (conv stage is stage 0, it has ReLU).
    All intermediates stay in vregs; only the final result is stored.
    """
    o_ref = refs[-1]
    wb = refs[:-1]
    h = x_ref[...]
    for li in range(n_layers):
        w = wb[2 * li][...]
        b = wb[2 * li + 1][...]                      # (1, N) f32, broadcasts over rows
        h = jnp.dot(h, w, preferred_element_type=jnp.float32) + b
        if li < n_layers - 1:
            h = jnp.maximum(h, 0.0)                  # VPU ReLU in f32
    o_ref[...] = h.astype(o_ref.dtype)


def _round_up(v, m):
    return ((v + m - 1) // m) * m


def _select_tm(B):
    """Batch tile selection (review items 1 & 2).

    * B <= 2048: single full-batch block (block == array dim is always legal).
    * large B: 1024-2048-row tiles, sized so the grid has >= 4 steps — gives
      v7x's two TensorCores work under dimension_semantics=("parallel",) and
      lets the double/triple-buffer pipeline overlap DMA with compute.
    """
    if B <= _TM_MAX:
        return B
    return min(_TM_MAX, max(_TM_MIN, _round_up(B // 8, 8)))


def _x_block_spec(tm, K, n_steps):
    """x input spec; triple-buffer the DMA-limited x stream when the grid is deep."""
    if n_steps >= 3 and hasattr(pl, "Buffered"):
        try:
            return pl.BlockSpec((tm, K), lambda i: (i, 0),
                                pipeline_mode=pl.Buffered(3))
        except TypeError:   # older jax without pipeline_mode kwarg
            pass
    return pl.BlockSpec((tm, K), lambda i: (i, 0))


def fused_forward(x, layers):
    """x: (B, K); layers: list of (w:(K_i,N_i), b:(1,N_i) f32). Returns (B, N_last) f32."""
    B, K = x.shape
    n_layers = len(layers)
    n_out = layers[-1][0].shape[1]

    tm = _select_tm(B)
    n_steps = pl.cdiv(B, tm)

    in_specs = [_x_block_spec(tm, K, n_steps)]
    flat_args = [x]
    for w, b in layers:
        # Weights / biases: constant index map -> DMA'd once, VMEM-resident
        # across all batch-grid steps (Mosaic hoists constant blocks).
        in_specs.append(pl.BlockSpec(w.shape, lambda i: (0, 0)))
        in_specs.append(pl.BlockSpec(b.shape, lambda i: (0, 0)))
        flat_args += [w, b]

    flops = 2 * B * sum(int(w.shape[0]) * int(w.shape[1]) for w, _ in layers)
    bytes_accessed = (x.size * x.dtype.itemsize + 4 * B * n_out +
                      sum(int(w.size) * w.dtype.itemsize + 4 * int(b.size)
                          for w, b in layers))

    return pl.pallas_call(
        functools.partial(_fused_mlp_kernel, n_layers=n_layers),
        out_shape=jax.ShapeDtypeStruct((B, n_out), jnp.float32),
        grid=(n_steps,),
        in_specs=in_specs,
        out_specs=pl.BlockSpec((tm, n_out), lambda i: (i, 0)),
        compiler_params=pltpu.CompilerParams(
            dimension_semantics=("parallel",)),          # v7x: shard batch over 2 TCs
        cost_estimate=pl.CostEstimate(
            flops=flops, transcendentals=0, bytes_accessed=bytes_accessed),
    )(*flat_args)


# ------------------------------ param handling ----------------------------- #

def init_params(key):
    """PyTorch-layout parameters (conv: OIHW weight + bias, fc: (in,out) + bias)."""
    params = {"conv": [], "fc": []}
    for ci, co in zip(CONV_ARCH[:-1], CONV_ARCH[1:]):
        key, kw_, kb_ = jax.random.split(key, 3)
        params["conv"].append({
            "w": 0.1 * jax.random.normal(kw_, (co, ci, KH, KW), jnp.float32),
            "b": 0.1 * jax.random.normal(kb_, (co,), jnp.float32),
        })
    for fi, fo in zip(FC_ARCH[:-1], FC_ARCH[1:]):
        key, kw_, kb_ = jax.random.split(key, 3)
        params["fc"].append({
            "w": 0.1 * jax.random.normal(kw_, (fi, fo), jnp.float32),
            "b": 0.1 * jax.random.normal(kb_, (fo,), jnp.float32),
        })
    return params


def prepare_fused_params(params, input_dtype=jnp.float32):
    """One-time prep: conv -> dense matrix, biases -> (1, N).

    The dense conv matrix is obtained by pushing the ny*nx identity (as one-hot
    images) through the exact lax.conv the reference uses, then flattening
    NCHW — so PyTorch's channel-major flatten order is reproduced exactly.

    `input_dtype=bfloat16` halves HBM traffic for x and W_conv (the kernel is
    HBM-read-bound on x); accumulation stays f32 on the MXU, bias/ReLU and the
    FC layers stay f32.
    """
    # TODO(synk): >1 conv layer would need ReLU between convs and cannot be
    #             collapsed into a single dense matrix; config here has one.
    assert len(params["conv"]) == 1
    w = params["conv"][0]["w"].astype(jnp.float32)
    b = params["conv"][0]["b"].astype(jnp.float32)
    co = w.shape[0]

    eye = jnp.eye(NY * NX, dtype=jnp.float32).reshape(NY * NX, 1, NY, NX)
    dense = jax.lax.conv_general_dilated(
        eye, w, window_strides=(STRIDE, STRIDE), padding="VALID",
        dimension_numbers=("NCHW", "OIHW", "NCHW"))          # (256, Co, OH, OW)
    w_conv = dense.reshape(NY * NX, co * _OH * _OW).astype(input_dtype)  # (256, 144)
    b_conv = jnp.broadcast_to(b[:, None, None], (co, _OH, _OW)).reshape(1, -1)

    layers = [(w_conv, b_conv.astype(jnp.float32))]
    for layer in params["fc"]:
        layers.append((layer["w"].astype(jnp.float32),
                       layer["b"].reshape(1, -1).astype(jnp.float32)))
    return layers


def test_branch_forward(fused_layers, x):
    """x: (B, ny*nx) -> (B, FC_ARCH[-1]) — mirrors _Test_Branch.forward.

    The reshape(B, ny, nx).unsqueeze(1) is absorbed into the dense conv matrix
    (same row-major pixel ordering), so the raw (B, 256) input goes straight in.
    """
    return fused_forward(x.astype(fused_layers[0][0].dtype), fused_layers)


# ----------------------- pure-JAX reference (no Pallas) --------------------- #

def _reference_forward(params, x):
    B = x.shape[0]
    h = x.reshape(B, NY, NX)[:, None, :, :]
    for layer in params["conv"]:
        h = jax.lax.conv_general_dilated(
            h, layer["w"], window_strides=(STRIDE, STRIDE), padding="VALID",
            dimension_numbers=("NCHW", "OIHW", "NCHW"))
        h = jax.nn.relu(h + layer["b"][None, :, None, None])
    h = h.reshape(B, -1)
    n_fc = len(params["fc"])
    for i, layer in enumerate(params["fc"]):
        h = h @ layer["w"] + layer["b"]
        if i < n_fc - 1:
            h = jax.nn.relu(h)
    return h


if __name__ == "__main__":
    key = jax.random.PRNGKey(0)
    key, kx, kx2 = jax.random.split(key, 3)
    params = init_params(key)

    # --- small-batch f32 run (module-consistent shapes), tight check --------
    fused_f32 = prepare_fused_params(params, jnp.float32)      # hoisted, once
    B = 2
    x = jax.random.normal(kx, (B, NY * NX), jnp.float32)        # (2, 256)

    out = jax.block_until_ready(test_branch_forward(fused_f32, x))
    assert out.shape == (B, FC_ARCH[-1]), out.shape
    ref = jax.block_until_ready(_reference_forward(params, x))
    assert jnp.allclose(out, ref, rtol=1e-4, atol=1e-4), (
        float(jnp.max(jnp.abs(out - ref))))

    # --- larger-batch run: exercises tm selection, multi-step grid, triple
    #     buffering and the bf16 input path (loose tolerance vs f32 reference).
    fused_bf16 = prepare_fused_params(params, jnp.bfloat16)
    B2 = 4096
    x2 = jax.random.normal(kx2, (B2, NY * NX), jnp.float32)

    out2 = jax.block_until_ready(test_branch_forward(fused_bf16, x2))
    assert out2.shape == (B2, FC_ARCH[-1]), out2.shape
    ref2 = jax.block_until_ready(_reference_forward(params, x2))
    assert jnp.allclose(out2, ref2, rtol=5e-2, atol=5e-2), (
        float(jnp.max(jnp.abs(out2 - ref2))))

    print("KERNEL_OK")
</pallas_src>

<mosaic_0001>
module attributes {stable_mosaic.version = 11 : i64} {
  func.func @_fused_mlp_kernel(%arg0: i32, %arg1: memref<2x256xf32, #tpu.memory_space<vmem>>, %arg2: memref<256x144xf32, #tpu.memory_space<vmem>>, %arg3: memref<1x144xf32, #tpu.memory_space<vmem>>, %arg4: memref<144x32xf32, #tpu.memory_space<vmem>>, %arg5: memref<1x32xf32, #tpu.memory_space<vmem>>, %arg6: memref<32x16xf32, #tpu.memory_space<vmem>>, %arg7: memref<1x16xf32, #tpu.memory_space<vmem>>, %arg8: memref<2x16xf32, #tpu.memory_space<vmem>>) attributes {dimension_semantics = [#tpu.dimension_semantics<parallel>], iteration_bounds = array<i64: 1>, scalar_prefetch = 0 : i64, scratch_operands = 0 : i64, tpu.core_type = #tpu.core_type<tc>, window_params = [{transform_indices = @transform_0, window_bounds = array<i64: 2, 256>}, {pipeline_mode = #tpu.pipeline_mode<synchronous>, transform_indices = @transform_1, window_bounds = array<i64: 256, 144>}, {pipeline_mode = #tpu.pipeline_mode<synchronous>, transform_indices = @transform_2, window_bounds = array<i64: 1, 144>}, {pipeline_mode = #tpu.pipeline_mode<synchronous>, transform_indices = @transform_3, window_bounds = array<i64: 144, 32>}, {pipeline_mode = #tpu.pipeline_mode<synchronous>, transform_indices = @transform_4, window_bounds = array<i64: 1, 32>}, {pipeline_mode = #tpu.pipeline_mode<synchronous>, transform_indices = @transform_5, window_bounds = array<i64: 32, 16>}, {pipeline_mode = #tpu.pipeline_mode<synchronous>, transform_indices = @transform_6, window_bounds = array<i64: 1, 16>}, {transform_indices = @transform_7, window_bounds = array<i64: 2, 16>}]} {
    %c0 = arith.constant 0 : index
    %c0_0 = arith.constant 0 : index
    %0 = vector.load %arg1[%c0, %c0_0] : memref<2x256xf32, #tpu.memory_space<vmem>>, vector<2x256xf32>
    %c0_1 = arith.constant 0 : index
    %c0_2 = arith.constant 0 : index
    %1 = vector.load %arg2[%c0_1, %c0_2] : memref<256x144xf32, #tpu.memory_space<vmem>>, vector<256x144xf32>
    %c0_3 = arith.constant 0 : index
    %c0_4 = arith.constant 0 : index
    %2 = vector.load %arg3[%c0_3, %c0_4] : memref<1x144xf32, #tpu.memory_space<vmem>>, vector<1x144xf32>
    %cst = arith.constant dense<0.000000e+00> : vector<2x144xf32>
    %3 = tpu.matmul %0, %1, %cst {dimension_numbers = #tpu.dot_dimension_numbers<[1], [0], [0], [1], [0, 0, 1, 1], [], []>} : vector<2x256xf32>, vector<256x144xf32>, vector<2x144xf32> -> vector<2x144xf32>
    %4 = vector.broadcast %2 : vector<1x144xf32> to vector<2x144xf32>
    %5 = arith.addf %3, %4 : vector<2x144xf32>
    %cst_5 = arith.constant 0.000000e+00 : f32
    %6 = vector.broadcast %cst_5 : f32 to vector<2x144xf32>
    %7 = arith.maximumf %5, %6 : vector<2x144xf32>
    %c0_6 = arith.constant 0 : index
    %c0_7 = arith.constant 0 : index
    %8 = vector.load %arg4[%c0_6, %c0_7] : memref<144x32xf32, #tpu.memory_space<vmem>>, vector<144x32xf32>
    %c0_8 = arith.constant 0 : index
    %c0_9 = arith.constant 0 : index
    %9 = vector.load %arg5[%c0_8, %c0_9] : memref<1x32xf32, #tpu.memory_space<vmem>>, vector<1x32xf32>
    %cst_10 = arith.constant dense<0.000000e+00> : vector<2x32xf32>
    %10 = tpu.matmul %7, %8, %cst_10 {dimension_numbers = #tpu.dot_dimension_numbers<[1], [0], [0], [1], [0, 0, 1, 1], [], []>} : vector<2x144xf32>, vector<144x32xf32>, vector<2x32xf32> -> vector<2x32xf32>
    %11 = vector.broadcast %9 : vector<1x32xf32> to vector<2x32xf32>
    %12 = arith.addf %10, %11 : vector<2x32xf32>
    %cst_11 = arith.constant 0.000000e+00 : f32
    %13 = vector.broadcast %cst_11 : f32 to vector<2x32xf32>
    %14 = arith.maximumf %12, %13 : vector<2x32xf32>
    %c0_12 = arith.constant 0 : index
    %c0_13 = arith.constant 0 : index
    %15 = vector.load %arg6[%c0_12, %c0_13] : memref<32x16xf32, #tpu.memory_space<vmem>>, vector<32x16xf32>
    %c0_14 = arith.constant 0 : index
    %c0_15 = arith.constant 0 : index
    %16 = vector.load %arg7[%c0_14, %c0_15] : memref<1x16xf32, #tpu.memory_space<vmem>>, vector<1x16xf32>
    %cst_16 = arith.constant dense<0.000000e+00> : vector<2x16xf32>
    %17 = tpu.matmul %14, %15, %cst_16 {dimension_numbers = #tpu.dot_dimension_numbers<[1], [0], [0], [1], [0, 0, 1, 1], [], []>} : vector<2x32xf32>, vector<32x16xf32>, vector<2x16xf32> -> vector<2x16xf32>
    %18 = vector.broadcast %16 : vector<1x16xf32> to vector<2x16xf32>
    %19 = arith.addf %17, %18 : vector<2x16xf32>
    %c0_17 = arith.constant 0 : index
    %c0_18 = arith.constant 0 : index
    %20 = vector.load %arg8[%c0_17, %c0_18] : memref<2x16xf32, #tpu.memory_space<vmem>>, vector<2x16xf32>
    tpu.vector_store %arg8[%c0_17, %c0_18], %19 {strides = array<i32>} : memref<2x16xf32, #tpu.memory_space<vmem>>, vector<2x16xf32>,
    return
  }
  func.func @transform_0(%arg0: i32) -> (i32, i32) {
    %c0_i32 = arith.constant 0 : i32
    %c0_i32_0 = arith.constant 0 : i32
    return %arg0, %c0_i32 : i32, i32
  }
  func.func @transform_1(%arg0: i32) -> (i32, i32) {
    %c0_i32 = arith.constant 0 : i32
    %c0_i32_0 = arith.constant 0 : i32
    %c0_i32_1 = arith.constant 0 : i32
    return %c0_i32, %c0_i32_0 : i32, i32
  }
  func.func @transform_2(%arg0: i32) -> (i32, i32) {
    %c0_i32 = arith.constant 0 : i32
    %c0_i32_0 = arith.constant 0 : i32
    %c0_i32_1 = arith.constant 0 : i32
    return %c0_i32, %c0_i32_0 : i32, i32
  }
  func.func @transform_3(%arg0: i32) -> (i32, i32) {
    %c0_i32 = arith.constant 0 : i32
    %c0_i32_0 = arith.constant 0 : i32
    %c0_i32_1 = arith.constant 0 : i32
    return %c0_i32, %c0_i32_0 : i32, i32
  }
  func.func @transform_4(%arg0: i32) -> (i32, i32) {
    %c0_i32 = arith.constant 0 : i32
    %c0_i32_0 = arith.constant 0 : i32
    %c0_i32_1 = arith.constant 0 : i32
    return %c0_i32, %c0_i32_0 : i32, i32
  }
  func.func @transform_5(%arg0: i32) -> (i32, i32) {
    %c0_i32 = arith.constant 0 : i32
    %c0_i32_0 = arith.constant 0 : i32
    %c0_i32_1 = arith.constant 0 : i32
    return %c0_i32, %c0_i32_0 : i32, i32
  }
  func.func @transform_6(%arg0: i32) -> (i32, i32) {
    %c0_i32 = arith.constant 0 : i32
    %c0_i32_0 = arith.constant 0 : i32
    %c0_i32_1 = arith.constant 0 : i32
    return %c0_i32, %c0_i32_0 : i32, i32
  }
  func.func @transform_7(%arg0: i32) -> (i32, i32) {
    %c0_i32 = arith.constant 0 : i32
    %c0_i32_0 = arith.constant 0 : i32
    return %arg0, %c0_i32 : i32, i32
  }
}

</mosaic_0001>

<bundles_post_ra>
// kernel: tpu_custom_call.1
= control target key start
LH: loop header
LB: loop body
LE: loop exit
PB: predicated region body
PF: predicated region fallthrough
CT: control target
= control target key end

     0   :  { %v535_v7 = vmov 0.0|0.0   ;;  %s877_s0 = inlined_call_operand.vmem [shape: f32[2,256], index: 0, kind: input, shape index: {}]   ;;  %s878_s1 = inlined_call_operand.vmem [shape: f32[256,144], index: 1, kind: input, shape index: {}]   ;;  %s879_s2 = inlined_call_operand.vmem [shape: f32[1,144], index: 2, kind: input, shape index: {}]   ;;  %s880_s3 = inlined_call_operand.vmem [shape: f32[144,32], index: 3, kind: input, shape index: {}]   ;;  %s881_s4 = inlined_call_operand.vmem [shape: f32[1,32], index: 4, kind: input, shape index: {}]   ;;  %s882_s5 = inlined_call_operand.vmem [shape: f32[32,16], index: 5, kind: input, shape index: {}]   ;;  %s883_s6 = inlined_call_operand.vmem [shape: f32[1,16], index: 6, kind: input, shape index: {}]   ;;  %s884_s7 = inlined_call_operand.hbm [shape: f32[2,16], index: 7, kind: output, shape index: {}]  }
   0x1   :  { %v29_v0 = vld [vmem:[%s878_s1 + $0x8] sm:$0xff]  ;;  %v31_v1 = vld [vmem:[%s878_s1 + $0x18] sm:$0xff]  ;;  %v28_v2 = vld [vmem:[%s878_s1] sm:$0xff]  ;;  %474 = vmatprep.subr.bf16.mxu1 %v535_v7 }
   0x2   :  { %v410_v3 = vpack.c.bf16 %v31_v1, %v29_v0  ;;  %v30_v4 = vld [vmem:[%s878_s1 + $0x10] sm:$0xff]  ;;  %v33_v5 = vld [vmem:[%s878_s1 + $0x28] sm:$0xff]  ;;  %v35_v6 = vld [vmem:[%s878_s1 + $0x38] sm:$0xff] }
   0x3   :  { %v412_v8 = vpack.c.bf16 %v30_v4, %v28_v2  ;;  %v414_v9 = vpack.c.bf16 %v35_v6, %v33_v5  ;;  %v32_v10 = vld [vmem:[%s878_s1 + $0x20] sm:$0xff]  ;;  %v34_v11 = vld [vmem:[%s878_s1 + $0x30] sm:$0xff]  ;;  %v37_v12 = vld [vmem:[%s878_s1 + $0x48] sm:$0xff] }
   0x4   :  { %411 = vmatprep.subr.bf16.mxu0 %v410_v3  ;;  %v39_v13 = vld [vmem:[%s878_s1 + $0x58] sm:$0xff]  ;;  %v416_v14 = vpack.c.bf16 %v34_v11, %v32_v10  ;;  %v36_v16 = vld [vmem:[%s878_s1 + $0x40] sm:$0xff]  ;;  %v38_v17 = vld [vmem:[%s878_s1 + $0x50] sm:$0xff] }
   0x5   :  { %413 = vmatpush1.bf16.msra.mxu0 %v412_v8  ;;  %v418_v15 = vpack.c.bf16 %v39_v13, %v37_v12  ;;  %v41_v18 = vld [vmem:[%s878_s1 + $0x68] sm:$0xff]  ;;  %v43_v19 = vld [vmem:[%s878_s1 + $0x78] sm:$0xff]  ;;  %v420_v20 = vpack.c.bf16 %v38_v17, %v36_v16  ;;  %v40_v22 = vld [vmem:[%s878_s1 + $0x60] sm:$0xff] }
   0x6   :  { %415 = vmatprep.subr.bf16.mxu0 %v414_v9  ;;  %v422_v21 = vpack.c.bf16 %v43_v19, %v41_v18  ;;  %v42_v23 = vld [vmem:[%s878_s1 + $0x70] sm:$0xff]  ;;  %v45_v24 = vld [vmem:[%s878_s1 + $0x88] sm:$0xff]  ;;  %v47_v25 = vld [vmem:[%s878_s1 + $0x98] sm:$0xff] }
   0x7   :  { %v424_v26 = vpack.c.bf16 %v42_v23, %v40_v22  ;;  %v426_v27 = vpack.c.bf16 %v47_v25, %v45_v24  ;;  %v44_v28 = vld [vmem:[%s878_s1 + $0x80] sm:$0xff]  ;;  %v46_v29 = vld [vmem:[%s878_s1 + $0x90] sm:$0xff]  ;;  %v49_v30 = vld [vmem:[%s878_s1 + $0xa8] sm:$0xff] }
   0x8   :  { %v51_v31 = vld [vmem:[%s878_s1 + $0xb8] sm:$0xff]  ;;  %v428_v32 = vpack.c.bf16 %v46_v29, %v44_v28  ;;  %v48_v34 = vld [vmem:[%s878_s1 + $0xa0] sm:$0xff]  ;;  %v50_v35 = vld [vmem:[%s878_s1 + $0xb0] sm:$0xff] }
   0x9   :  { %417 = vmatpush1.bf16.msra.mxu0 %v416_v14  ;;  %v430_v33 = vpack.c.bf16 %v51_v31, %v49_v30  ;;  %v53_v36 = vld [vmem:[%s878_s1 + $0xc8] sm:$0xff]  ;;  %v55_v37 = vld [vmem:[%s878_s1 + $0xd8] sm:$0xff]  ;;  %v432_v38 = vpack.c.bf16 %v50_v35, %v48_v34  ;;  %v52_v39 = vld [vmem:[%s878_s1 + $0xc0] sm:$0xff] }
   0xa   :  { %419 = vmatprep.subr.bf16.mxu0 %v418_v15  ;;  %v54_v40 = vld [vmem:[%s878_s1 + $0xd0] sm:$0xff]  ;;  %v57_v41 = vld [vmem:[%s878_s1 + $0xe8] sm:$0xff]  ;;  %v434_v42 = vpack.c.bf16 %v55_v37, %v53_v36  ;;  %v59_v43 = vld [vmem:[%s878_s1 + $0xf8] sm:$0xff] }
   0xb   :  { %v673_v44 = vld.sshfl [vmem:[%s877_s0] sm:$0x33 pattern:$0x76325410]  ;;  %v189_v47 = vld [vmem:[%s880_s3 + $0x8] sm:$0xff]  ;;  %v190_v48 = vld [vmem:[%s880_s3 + $0x10] sm:$0xff]  ;;  %v436_v51 = vpack.c.bf16 %v54_v40, %v52_v39  ;;  %v438_v53 = vpack.c.bf16 %v59_v43, %v57_v41 }
   0xc   :  { %v188_v45 = vld [vmem:[%s880_s3] sm:$0xff]  ;;  %v112_v46 = vcombine.high %v673_v44, %v673_v44  ;;  %v191_v49 = vld [vmem:[%s880_s3 + $0x18] sm:$0xff]  ;;  %v58_v54 = vld [vmem:[%s878_s1 + $0xf0] sm:$0xff] }
   0xd   :  { %421 = vmatpush1.bf16.msra.mxu0 %v420_v20  ;;  %v475_v50 = vpack.c.bf16 %v189_v47, %v188_v45  ;;  %v56_v52 = vld [vmem:[%s878_s1 + $0xe0] sm:$0xff]  ;;  %v61_v55 = vld [vmem:[%s878_s1 + $0x108] sm:$0xff]  ;;  %v63_v56 = vld [vmem:[%s878_s1 + $0x118] sm:$0xff]  ;;  %v478_v57 = vpack.c.bf16 %v191_v49, %v190_v48 }
   0xe   :  { %423 = vmatprep.subr.bf16.mxu0 %v422_v21  ;;  %179 = vmatprep.mubr.f32.mxu0 %v112_v46  ;;  %v192_v58 = vld [vmem:[%s880_s3 + $0x20] sm:$0xff]  ;;  %v193_v59 = vld [vmem:[%s880_s3 + $0x28] sm:$0xff] }
   0xf   :  { %476 = vmatpush1.bf16.msra.mxu1 %v475_v50 }
  0x10   :  { %477 = vmatprep.subr.bf16.mxu1 %v535_v7 }
  0x11   :  { %425 = vmatpush1.bf16.msra.mxu0 %v424_v26 }
  0x12   :  { %427 = vmatprep.subr.bf16.mxu0 %v426_v27 }
  0x15   :  { %429 = vmatpush1.bf16.msra.mxu0 %v428_v32 }
  0x16   :  { %431 = vmatprep.subr.bf16.mxu0 %v430_v33 }
  0x19   :  { %433 = vmatpush1.bf16.msra.mxu0 %v432_v38 }
  0x1a   :  { %435 = vmatprep.subr.bf16.mxu0 %v434_v42 }
  0x1b   :  { %12 = vsyncpa [#allocation3], 0  ;;  %v440_v60 = vpack.c.bf16 %v58_v54, %v56_v52  ;;  %v442_v61 = vpack.c.bf16 %v63_v56, %v61_v55  ;;  %v60_v62 = vld [vmem:[%s878_s1 + $0x100] sm:$0xff]  ;;  %v62_v63 = vld [vmem:[%s878_s1 + $0x110] sm:$0xff]  ;;  %479 = vmatpush1.bf16.msra.mxu1 %v478_v57  ;;  %v481_v1 = vpack.c.bf16 %v193_v59, %v192_v58  ;;  %vm213_vm0 = vcmask 130048  }
  0x1c   :  { %v65_v0 = vld [vmem:[%s878_s1 + $0x128] sm:$0xff]  ;;  %v67_v2 = vld [vmem:[%s878_s1 + $0x138] sm:$0xff]  ;;  %480 = vmatprep.subr.bf16.mxu1 %v535_v7  ;;  %v194_v3 = vld [vmem:[%s880_s3 + $0x30] sm:$0xff]  ;;  %v444_v5 = vpack.c.bf16 %v62_v63, %v60_v62  ;;  %v94_v63 = vlaneseq  ;;  %vm536_vm1 = vmmov 0   ;;  %vm299_vm2 = vcmask 261120  }
  0x1d   :  { %437 = vmatpush1.bf16.msra.mxu0 %v436_v51  ;;  %v195_v4 = vld [vmem:[%s880_s3 + $0x38] sm:$0xff]  ;;  %v446_v6 = vpack.c.bf16 %v67_v2, %v65_v0  ;;  %v64_v8 = vld [vmem:[%s878_s1 + $0x120] sm:$0xff]  ;;  %v66_v9 = vld [vmem:[%s878_s1 + $0x130] sm:$0xff]  ;;  %vm373_vm3 = vcmask 123904  }
  0x1e   :  { %439 = vmatprep.subr.bf16.mxu0 %v438_v53  ;;  %v69_v10 = vld [vmem:[%s878_s1 + $0x148] sm:$0xff]  ;;  %v484_v11 = vpack.c.bf16 %v195_v4, %v194_v3  ;;  %v71_v12 = vld [vmem:[%s878_s1 + $0x158] sm:$0xff]  ;;  %v196_v13 = vld [vmem:[%s880_s3 + $0x40] sm:$0xff]  ;;  %v448_v15 = vpack.c.bf16 %v66_v9, %v64_v8  ;;  %v95_v0 = vshrl.u32 %v94_v63, 7 }
  0x1f   :  { %482 = vmatpush1.bf16.msra.mxu1 %v481_v1  ;;  %v197_v14 = vld [vmem:[%s880_s3 + $0x48] sm:$0xff]  ;;  %v450_v16 = vpack.c.bf16 %v71_v12, %v69_v10  ;;  %v68_v17 = vld [vmem:[%s878_s1 + $0x140] sm:$0xff]  ;;  %v70_v18 = vld [vmem:[%s878_s1 + $0x150] sm:$0xff] }
  0x20   :  { %483 = vmatprep.subr.bf16.mxu1 %v535_v7  ;;  %v73_v19 = vld [vmem:[%s878_s1 + $0x168] sm:$0xff]  ;;  %v487_v20 = vpack.c.bf16 %v197_v14, %v196_v13  ;;  %v75_v21 = vld [vmem:[%s878_s1 + $0x178] sm:$0xff]  ;;  %v198_v22 = vld [vmem:[%s880_s3 + $0x50] sm:$0xff]  ;;  %v452_v24 = vpack.c.bf16 %v70_v18, %v68_v17  ;;  %v96_v1 = vsub.s32 0, %v95_v0  ;;  %v100_v3 = vsub.s32 1, %v95_v0 }
  0x21   :  { %441 = vmatpush1.bf16.msra.mxu0 %v440_v60  ;;  %v199_v23 = vld [vmem:[%s880_s3 + $0x58] sm:$0xff]  ;;  %v454_v25 = vpack.c.bf16 %v75_v21, %v73_v19  ;;  %v72_v26 = vld [vmem:[%s878_s1 + $0x160] sm:$0xff]  ;;  %v74_v27 = vld [vmem:[%s878_s1 + $0x170] sm:$0xff]  ;;  %v537_v19 = vmov 0.0  }
  0x22   :  { %443 = vmatprep.subr.bf16.mxu0 %v442_v61  ;;  %v77_v28 = vld [vmem:[%s878_s1 + $0x188] sm:$0xff]  ;;  %v490_v29 = vpack.c.bf16 %v199_v23, %v198_v22  ;;  %v79_v30 = vld [vmem:[%s878_s1 + $0x198] sm:$0xff]  ;;  %v200_v31 = vld [vmem:[%s880_s3 + $0x60] sm:$0xff]  ;;  %v456_v33 = vpack.c.bf16 %v74_v27, %v72_v26 }
  0x23   :  { %485 = vmatpush1.bf16.msra.mxu1 %v484_v11  ;;  %v201_v32 = vld [vmem:[%s880_s3 + $0x68] sm:$0xff]  ;;  %v458_v34 = vpack.c.bf16 %v79_v30, %v77_v28  ;;  %v76_v35 = vld [vmem:[%s878_s1 + $0x180] sm:$0xff]  ;;  %v78_v36 = vld [vmem:[%s878_s1 + $0x190] sm:$0xff] }
  0x24   :  { %486 = vmatprep.subr.bf16.mxu1 %v535_v7  ;;  %v493_v37 = vpack.c.bf16 %v201_v32, %v200_v31  ;;  %v81_v38 = vld [vmem:[%s878_s1 + $0x1a8] sm:$0xff]  ;;  %v83_v39 = vld [vmem:[%s878_s1 + $0x1b8] sm:$0xff]  ;;  %v460_v40 = vpack.c.bf16 %v78_v36, %v76_v35  ;;  %v80_v42 = vld [vmem:[%s878_s1 + $0x1a0] sm:$0xff] }
  0x25   :  { %445 = vmatpush1.bf16.msra.mxu0 %v444_v5  ;;  %v462_v41 = vpack.c.bf16 %v83_v39, %v81_v38  ;;  %v82_v43 = vld [vmem:[%s878_s1 + $0x1b0] sm:$0xff]  ;;  %v85_v45 = vld [vmem:[%s878_s1 + $0x1c8] sm:$0xff]  ;;  %v87_v46 = vld [vmem:[%s878_s1 + $0x1d8] sm:$0xff] }
  0x26   :  { %447 = vmatprep.subr.bf16.mxu0 %v446_v6  ;;  %v464_v47 = vpack.c.bf16 %v82_v43, %v80_v42  ;;  %v466_v48 = vpack.c.bf16 %v87_v46, %v85_v45  ;;  %v84_v49 = vld [vmem:[%s878_s1 + $0x1c0] sm:$0xff]  ;;  %v86_v50 = vld [vmem:[%s878_s1 + $0x1d0] sm:$0xff]  ;;  %v89_v51 = vld [vmem:[%s878_s1 + $0x1e8] sm:$0xff] }
  0x27   :  { %488 = vmatpush1.bf16.msra.mxu1 %v487_v20  ;;  %v91_v52 = vld [vmem:[%s878_s1 + $0x1f8] sm:$0xff]  ;;  %v468_v53 = vpack.c.bf16 %v86_v50, %v84_v49  ;;  %v88_v55 = vld [vmem:[%s878_s1 + $0x1e0] sm:$0xff]  ;;  %v90_v56 = vld [vmem:[%s878_s1 + $0x1f0] sm:$0xff] }
  0x28   :  { %489 = vmatprep.subr.bf16.mxu1 %v535_v7  ;;  %v470_v54 = vpack.c.bf16 %v91_v52, %v89_v51  ;;  %v472_v57 = vpack.c.bf16 %v90_v56, %v88_v55  ;;  %v202_v58 = vld [vmem:[%s880_s3 + $0x70] sm:$0xff]  ;;  %v203_v59 = vld [vmem:[%s880_s3 + $0x78] sm:$0xff]  ;;  %v204_v61 = vld [vmem:[%s880_s3 + $0x80] sm:$0xff] }
  0x29   :  { %449 = vmatpush1.bf16.msra.mxu0 %v448_v15  ;;  %v496_v60 = vpack.c.bf16 %v203_v59, %v202_v58  ;;  %v92_v2 = vld [vmem:[%s879_s2] sm:$0x3]  ;;  %v289_v11 = vld [vmem:[%s882_s5 + $0x8] sm:$0xff]  ;;  %v291_v17 = vld [vmem:[%s882_s5 + $0x18] sm:$0xff] }
  0x2a   :  { %451 = vmatprep.subr.bf16.mxu0 %v450_v16  ;;  %v97_v4 = vrot.slane %v92_v2, %v96_v1  ;;  %v101_v5 = vrot.slane %v92_v2, %v100_v3  ;;  %v288_v10 = vld [vmem:[%s882_s5] sm:$0xff]  ;;  %v290_v16 = vld [vmem:[%s882_s5 + $0x10] sm:$0xff]  ;;  %s538_s5 = smov [#allocation2]  }
  0x2b   :  { %491 = vmatpush1.bf16.msra.mxu1 %v490_v29  ;;  %v502_v14 = vpack.c.bf16 %v289_v11, %v288_v10  ;;  %v505_v18 = vpack.c.bf16 %v291_v17, %v290_v16  ;;  %v390_v20 = vld [vmem:[%s881_s4] ss:$0 sm:$0xff]  ;;  %s381_s12 = sshll.u32 %s538_s5, 4  ;;  %s382_s12 = int_to_ptr.vmem [resolvable:$true] %s381_s12 }
  0x2c   :  { %492 = vmatprep.subr.bf16.mxu1 %v535_v7  ;;  %s511_s13 = scalar_lea.vmem %s382_s12, 32  ;;  %p516_p1 = scmp.lt.s32.totalorder %s382_s12, %s382_s12 }
  0x2d   :  { %453 = vmatpush1.bf16.msra.mxu0 %v452_v24  ;;  %v392_v24 = vld [vmem:[%s883_s6] ss:$0 sm:$0xff]  ;;  %p512_p0 = scmp.ne.s32.totalorder %s382_s12, %s511_s13  ;;  %p517_p2 = scmp.lt.s32.totalorder %s511_s13, %s511_s13 }
  0x2e   :  { %455 = vmatprep.subr.bf16.mxu0 %v454_v25 }
  0x2f   :  { %494 = vmatpush1.bf16.msra.mxu1 %v493_v37  ;;  %p518_p3 = por %p517_p2, %p516_p1 }
  0x30   :  { %495 = vmatprep.subr.bf16.mxu1 %v535_v7 }
  0x31   :  { %457 = vmatpush1.bf16.msra.mxu0 %v456_v33  ;;  %p519_p4 = pnand %p518_p3, %p512_p0 }
  0x32   :  { %459 = vmatprep.subr.bf16.mxu0 %v458_v34 }
  0x33   :  { %497 = vmatpush1.bf16.msra.mxu1 %v496_v60 }
  0x34   :  { %498 = vmatprep.subr.bf16.mxu1 %v535_v7 }
  0x35   :  { %461 = vmatpush1.bf16.msra.mxu0 %v460_v40 }
  0x36   :  { %463 = vmatprep.subr.bf16.mxu0 %v462_v41 }
  0x39   :  { %465 = vmatpush1.bf16.msra.mxu0 %v464_v47 }
  0x3a   :  { %467 = vmatprep.subr.bf16.mxu0 %v466_v48 }
  0x3d   :  { %469 = vmatpush1.bf16.msra.mxu0 %v468_v53 }
  0x3e   :  { %471 = vmatprep.subr.bf16.mxu0 %v470_v54 }
  0x41   :  { %473 = vmatpush1.bf16.msra.mxu0 %v472_v57 }
  0x44   :  { %180 = vmatmul.mubr.f32.vlgmr.msra.gmra.mrb[0].mxu0 %v673_v44  ;;  %v205_v44 = vld [vmem:[%s880_s3 + $0x88] sm:$0xff] }
  0x45   :  { %v499_v62 = vpack.c.bf16 %v205_v44, %v204_v61 }
  0x47   :  { %500 = vmatpush1.bf16.msra.mxu1 %v499_v62 }
  0x48   :  { %501 = vmatprep.subr.bf16.mxu1 %v535_v7 }
 0x117   :  { %v181_v6 = vpop.f32.mrb[0].mxu0 }
 0x118   :  { %v182_v8 = vadd.f32 %v181_v6, %v97_v4  ;;  %v183_v9 = vpop.f32.mrb[1].mxu0 }
 0x119   :  { %v184_v12 = vadd.f32 %v183_v9, %v101_v5 }
 0x11a   :  { %v186_v15 = vmax.f32 %v182_v8, 0.0 }
 0x11b   :  { %v187_v13 = vmax.f32 %v184_v12, 0.0 }
 0x11d   :  { %391 = vmatprep.mubr.msk.f32.mxu1 %vm213_vm0, %v187_v13 }
 0x11e   :  { %282 = vmatmul.mubr.f32.vlgmr.msra.gmra.mrb[0].mxu1 %v186_v15 }
 0x11f   :  { %503 = vmatpush3.bf16.msra.mxu1 %v502_v14  ;;  %407 = vmatprep.mubr.msk.f32.mxu1 %vm536_vm1, %v537_v19 }
 0x120   :  { %504 = vmatprep.subr.bf16.mxu1 %v535_v7 }
 0x123   :  { %506 = vmatpush3.bf16.msra.mxu1 %v505_v18 }
 0x1f1   :  { %v283_v21 = vpop.f32.mrb[0].mxu1 }
 0x1f2   :  { %v284_v22 = vadd.f32 %v390_v20, %v283_v21  ;;  %v285_v7 = vpop.f32.mrb[1].mxu1 }
 0x1f4   :  { %v287_v23 = vmax.f32 %v284_v22, 0.0 }
 0x1f6   :  { %408 = vmatmul.mubr.msk.f32.vlgmr.msra.gmra.mrb[2].mxu1 %vm299_vm2, %v287_v23 }
 0x2c9   :  { %v369_v25 = vpop.f32.mrb[2].mxu1 }
 0x2ca   :  { %v370_v26 = vadd.f32 %v392_v24, %v369_v25  ;;  %v409_v27 = vpop.f32.mrb[3].mxu1 }
 0x2cc   :  { %374 = vst.msk [vmem:[#allocation2] sm:$0x3] %vm373_vm3, %v370_v26 }
 0x2cd   :  { %522 = shalt.err (!%p519_p4)
}
 0x2ce   :  { %s523_s15 = scalar_lea.hbm %s884_s7, 32 }
 0x2cf   :  { %p524_p5 = scmp.ne.s32.totalorder %s884_s7, %s523_s15  ;;  %p527_p6 = scmp.lt.u32.totalorder %s523_s15, %s884_s7 }
 0x2d1   :  { %p529_p7 = pnand %p527_p6, %p524_p5 }
 0x2d3   :  { %532 = shalt.err (!%p529_p7)
}
 0x2d4   :  { %384 = dma.vmem_to_hbm [thread:$0]  %s382_s12, 32, %s884_s7, [#allocation3]  }
 0x2d5   :  { %533 = dma.done.wait [#allocation3], 32  }
 0x2d6   :  { %534 = vsyncadd [#allocation3], 4294967264 }
 0x2d7   :  { %388 = vsyncpa [#allocation3], 1 }

</bundles_post_ra>
